<compile_context>
chip_gen: v6e
topology: v6e:2x2x1
jax: 0.10.0
libtpu: 0.0.40
codegen_flags: <defaults>
</compile_context>

<pallas_src>
import functools

import jax
import jax.numpy as jnp
from jax import lax
from jax.experimental import pallas as pl
from jax.experimental.pallas import tpu as pltpu


def _round_up(v, m):
    return (v + m - 1) // m * m


def _vmem_capacity_bytes():
    """Physical VMEM of the attached chip; conservative fallback if unknown."""
    try:
        return int(pltpu.get_tpu_info().vmem_capacity_bytes)
    except Exception:
        return 64 * 1024 * 1024  # v7x-sized conservative default


def _knn_graph_kernel(q_ref, key_ref, out_ref, *, k):
    """One (batch, query-tile) grid step.

    q_ref:   (1, C, TQ) pre-normalized query columns of this tile.
    key_ref: (1, C, N)  pre-normalized points of this batch element.
    out_ref: (1, k, TQ) int32 nearest-neighbour indices, lane-dense in TQ.
    """
    q = q_ref[0]        # (C, TQ)  channels on sublanes
    kx = key_ref[0]     # (C, N)

    # Cosine similarity.  Rows are L2-normalized in the wrapper, so
    # topk(-dist) == topk(sim) and selection runs directly on the MXU result.
    # Contracting dim 0 of both operands keeps channels on sublanes: no
    # in-kernel transpose copies and no lane padding of the small C axis.
    sim = lax.dot_general(
        q, kx,
        dimension_numbers=(((0,), (0,)), ((), ())),
        preferred_element_type=jnp.float32)                 # (TQ, N)

    tq, n = sim.shape
    col_ids = lax.broadcasted_iota(jnp.int32, (tq, n), 1)

    # Iterative top-k (k is small & static).  max/where/min implements argmax
    # with deterministic first-index tie-breaking using only plain reductions
    # and selects.  `sim` is the single live (TQ, N) carry.
    rows = []
    for kk in range(k):
        best = jnp.max(sim, axis=-1, keepdims=True)                     # (TQ, 1)
        idx = jnp.min(jnp.where(sim == best, col_ids, n), axis=-1)      # (TQ,)
        rows.append(idx[None, :])
        if kk + 1 < k:
            sim = jnp.where(col_ids == idx[:, None], -jnp.inf, sim)

    # Single lane-dense store of the whole (k, TQ) block.
    out_ref[0] = jnp.concatenate(rows, axis=0)


def dense_dilated_knn_graph(x, k, *, use_bf16_matmul=False):
    """x: (B, C, N, 1) float array.  Returns edge_idx (2, B, N, k) int32."""
    B, C, N, W = x.shape
    assert W == 1, "expects trailing spatial dim of size 1 (point-cloud layout)"
    assert 1 <= k <= N

    # --- glue: fold F.normalize(x, p=2, dim=1) into one XLA elementwise pass
    # (eps=1e-12 clamp; rsqrt(max(ss, eps^2)) == 1/max(||x||, eps)).
    xt = x[..., 0].astype(jnp.float32)                                   # (B, C, N)
    inv_norm = lax.rsqrt(jnp.maximum(jnp.sum(xt * xt, axis=1, keepdims=True), 1e-24))
    xn = xt * inv_norm
    in_dtype = jnp.bfloat16 if use_bf16_matmul else jnp.float32
    xn = xn.astype(in_dtype)
    in_itemsize = jnp.dtype(in_dtype).itemsize

    # --- generation-aware tiling / VMEM budgeting.
    vmem_cap = _vmem_capacity_bytes()
    tq_cap = 512 if vmem_cap >= (96 << 20) else 256   # v5e/v6e: 512, v7x: 256

    c_pad = _round_up(C, 8)
    n_pad = _round_up(N, 128)

    def est_bytes(tq_):
        tq_pad = _round_up(tq_, 128)
        b = (2 * c_pad * n_pad * in_itemsize            # key block, double-buffered
             + 2 * c_pad * tq_pad * in_itemsize         # query tile, double-buffered
             + 2 * _round_up(k, 8) * tq_pad * 4         # output tile, double-buffered
             + 4 * tq_pad * n_pad * 4)                  # sim + select/iota temporaries
        return int(b * 1.3)                             # headroom

    budget = int(vmem_cap * 0.7)

    if N <= tq_cap:
        if B == 1 and N >= 256:
            # Expose >= 2 grid steps so both v7x TensorCores get work.
            tq = _round_up((N + 1) // 2, 128)
        else:
            tq = N
    else:
        tq = tq_cap
        while tq > 128 and est_bytes(tq) > budget:
            tq -= 128
    num_q = pl.cdiv(N, tq)

    vmem_limit = int(min(max(est_bytes(tq), 32 << 20), int(vmem_cap * 0.9)))

    nn_kn = pl.pallas_call(
        functools.partial(_knn_graph_kernel, k=k),
        out_shape=jax.ShapeDtypeStruct((B, k, N), jnp.int32),
        grid_spec=pltpu.PrefetchScalarGridSpec(
            num_scalar_prefetch=0,
            grid=(B, num_q),
            in_specs=[
                pl.BlockSpec((1, C, tq), lambda b, q: (b, 0, q)),   # query columns
                pl.BlockSpec((1, C, N), lambda b, q: (b, 0, 0)),    # all keys of batch b
            ],
            out_specs=pl.BlockSpec((1, k, tq), lambda b, q: (b, 0, q)),
        ),
        compiler_params=pltpu.CompilerParams(
            dimension_semantics=("parallel", "parallel"),
            vmem_limit_bytes=vmem_limit,
        ),
    )(xn, xn)

    # (B, k, N) -> (B, N, k); constant center_idx, transpose and stack live in
    # XLA so the kernel writeback stays lane-dense and halved.
    nn_idx = jnp.transpose(nn_kn, (0, 2, 1))
    center_idx = jnp.broadcast_to(
        jnp.arange(N, dtype=jnp.int32)[None, :, None], (B, N, k))
    # DenseDilated with stride-1 slicing is the identity.
    return jnp.stack((nn_idx, center_idx), axis=0)             # (2, B, N, k)


if __name__ == "__main__":
    # Small shapes consistent with the module: batch=2, channels=4, points=16.
    B, C, N, k = 2, 4, 16, 8
    key = jax.random.PRNGKey(0)
    x = jax.random.normal(key, (B, C, N, 1), dtype=jnp.float32)

    edge_idx = dense_dilated_knn_graph(x, k)
    edge_idx = jax.block_until_ready(edge_idx)

    # Sanity checks.
    assert edge_idx.shape == (2, B, N, k)
    assert edge_idx.dtype == jnp.int32
    # center indices are deterministic: arange(N) broadcast along k.
    expected_center = jnp.broadcast_to(
        jnp.arange(N, dtype=jnp.int32)[None, :, None], (B, N, k))
    assert bool(jnp.all(edge_idx[1] == expected_center))
    # neighbour indices are valid point indices.
    assert bool(jnp.all((edge_idx[0] >= 0) & (edge_idx[0] < N)))

    # Pure-JAX reference (same math as the PyTorch module); compare the
    # neighbour *sets* (tie-order agnostic).
    xr = jnp.transpose(x[..., 0], (0, 2, 1)).astype(jnp.float32)         # (B, N, C)
    xr = xr / jnp.maximum(
        jnp.sqrt(jnp.sum(xr * xr, axis=-1, keepdims=True)), 1e-12)
    sim_ref = jnp.einsum("bnc,bmc->bnm", xr, xr)
    _, ref_idx = jax.lax.top_k(sim_ref, k)                               # (B, N, k)
    assert bool(jnp.all(jnp.sort(edge_idx[0], axis=-1)
                        == jnp.sort(ref_idx.astype(jnp.int32), axis=-1)))

    print("KERNEL_OK")
</pallas_src>

<mosaic_0001>
module attributes {stable_mosaic.version = 11 : i64} {
  func.func @_knn_graph_kernel(%arg0: i32, %arg1: i32, %arg2: memref<1x4x16xf32, #tpu.memory_space<vmem>>, %arg3: memref<1x4x16xf32, #tpu.memory_space<vmem>>, %arg4: memref<1x8x16xi32, #tpu.memory_space<vmem>>) attributes {dimension_semantics = [#tpu.dimension_semantics<parallel>, #tpu.dimension_semantics<parallel>], iteration_bounds = array<i64: 2, 1>, scalar_prefetch = 0 : i64, scratch_operands = 0 : i64, tpu.core_type = #tpu.core_type<tc>, window_params = [{transform_indices = @transform_0, window_bounds = array<i64: 1, 4, 16>}, {transform_indices = @transform_1, window_bounds = array<i64: 1, 4, 16>}, {transform_indices = @transform_2, window_bounds = array<i64: 1, 8, 16>}]} {
    %c0 = arith.constant 0 : index
    %c0_0 = arith.constant 0 : index
    %c0_1 = arith.constant 0 : index
    %0 = vector.load %arg2[%c0, %c0_0, %c0_1] : memref<1x4x16xf32, #tpu.memory_space<vmem>>, vector<1x4x16xf32>
    %1 = vector.shape_cast %0 : vector<1x4x16xf32> to vector<4x16xf32>
    %c0_2 = arith.constant 0 : index
    %c0_3 = arith.constant 0 : index
    %c0_4 = arith.constant 0 : index
    %2 = vector.load %arg3[%c0_2, %c0_3, %c0_4] : memref<1x4x16xf32, #tpu.memory_space<vmem>>, vector<1x4x16xf32>
    %3 = vector.shape_cast %2 : vector<1x4x16xf32> to vector<4x16xf32>
    %cst = arith.constant dense<0.000000e+00> : vector<16x16xf32>
    %4 = tpu.matmul %1, %3, %cst {dimension_numbers = #tpu.dot_dimension_numbers<[0], [0], [1], [1], [0, 1, 1, 1], [], []>} : vector<4x16xf32>, vector<4x16xf32>, vector<16x16xf32> -> vector<16x16xf32>
    %5 = tpu.iota {dimensions = array<i32: 1>} : vector<16x16xi32>
    %cst_5 = arith.constant dense<0xFF800000> : vector<16xf32>
    %6 = vector.multi_reduction <maximumf>, %4, %cst_5 [1] : vector<16x16xf32> to vector<16xf32>
    %7 = vector.shape_cast %6 : vector<16xf32> to vector<16x1xf32>
    %8 = vector.broadcast %7 : vector<16x1xf32> to vector<16x16xf32>
    %9 = arith.cmpf oeq, %4, %8 : vector<16x16xf32>
    %c16_i32 = arith.constant 16 : i32
    %10 = vector.broadcast %c16_i32 : i32 to vector<16x16xi32>
    %11 = arith.select %9, %5, %10 : vector<16x16xi1>, vector<16x16xi32>
    %cst_6 = arith.constant dense<2147483647> : vector<16xi32>
    %12 = vector.multi_reduction <minsi>, %11, %cst_6 [1] : vector<16x16xi32> to vector<16xi32>
    %13 = vector.shape_cast %12 : vector<16xi32> to vector<1x16xi32>
    %14 = vector.shape_cast %12 : vector<16xi32> to vector<16x1xi32>
    %15 = vector.broadcast %14 : vector<16x1xi32> to vector<16x16xi32>
    %16 = arith.cmpi eq, %5, %15 : vector<16x16xi32>
    %cst_7 = arith.constant 0xFF800000 : f32
    %17 = vector.broadcast %cst_7 : f32 to vector<16x16xf32>
    %18 = arith.select %16, %17, %4 : vector<16x16xi1>, vector<16x16xf32>
    %cst_8 = arith.constant dense<0xFF800000> : vector<16xf32>
    %19 = vector.multi_reduction <maximumf>, %18, %cst_8 [1] : vector<16x16xf32> to vector<16xf32>
    %20 = vector.shape_cast %19 : vector<16xf32> to vector<16x1xf32>
    %21 = vector.broadcast %20 : vector<16x1xf32> to vector<16x16xf32>
    %22 = arith.cmpf oeq, %18, %21 : vector<16x16xf32>
    %c16_i32_9 = arith.constant 16 : i32
    %23 = vector.broadcast %c16_i32_9 : i32 to vector<16x16xi32>
    %24 = arith.select %22, %5, %23 : vector<16x16xi1>, vector<16x16xi32>
    %cst_10 = arith.constant dense<2147483647> : vector<16xi32>
    %25 = vector.multi_reduction <minsi>, %24, %cst_10 [1] : vector<16x16xi32> to vector<16xi32>
    %26 = vector.shape_cast %25 : vector<16xi32> to vector<1x16xi32>
    %27 = vector.shape_cast %25 : vector<16xi32> to vector<16x1xi32>
    %28 = vector.broadcast %27 : vector<16x1xi32> to vector<16x16xi32>
    %29 = arith.cmpi eq, %5, %28 : vector<16x16xi32>
    %cst_11 = arith.constant 0xFF800000 : f32
    %30 = vector.broadcast %cst_11 : f32 to vector<16x16xf32>
    %31 = arith.select %29, %30, %18 : vector<16x16xi1>, vector<16x16xf32>
    %cst_12 = arith.constant dense<0xFF800000> : vector<16xf32>
    %32 = vector.multi_reduction <maximumf>, %31, %cst_12 [1] : vector<16x16xf32> to vector<16xf32>
    %33 = vector.shape_cast %32 : vector<16xf32> to vector<16x1xf32>
    %34 = vector.broadcast %33 : vector<16x1xf32> to vector<16x16xf32>
    %35 = arith.cmpf oeq, %31, %34 : vector<16x16xf32>
    %c16_i32_13 = arith.constant 16 : i32
    %36 = vector.broadcast %c16_i32_13 : i32 to vector<16x16xi32>
    %37 = arith.select %35, %5, %36 : vector<16x16xi1>, vector<16x16xi32>
    %cst_14 = arith.constant dense<2147483647> : vector<16xi32>
    %38 = vector.multi_reduction <minsi>, %37, %cst_14 [1] : vector<16x16xi32> to vector<16xi32>
    %39 = vector.shape_cast %38 : vector<16xi32> to vector<1x16xi32>
    %40 = vector.shape_cast %38 : vector<16xi32> to vector<16x1xi32>
    %41 = vector.broadcast %40 : vector<16x1xi32> to vector<16x16xi32>
    %42 = arith.cmpi eq, %5, %41 : vector<16x16xi32>
    %cst_15 = arith.constant 0xFF800000 : f32
    %43 = vector.broadcast %cst_15 : f32 to vector<16x16xf32>
    %44 = arith.select %42, %43, %31 : vector<16x16xi1>, vector<16x16xf32>
    %cst_16 = arith.constant dense<0xFF800000> : vector<16xf32>
    %45 = vector.multi_reduction <maximumf>, %44, %cst_16 [1] : vector<16x16xf32> to vector<16xf32>
    %46 = vector.shape_cast %45 : vector<16xf32> to vector<16x1xf32>
    %47 = vector.broadcast %46 : vector<16x1xf32> to vector<16x16xf32>
    %48 = arith.cmpf oeq, %44, %47 : vector<16x16xf32>
    %c16_i32_17 = arith.constant 16 : i32
    %49 = vector.broadcast %c16_i32_17 : i32 to vector<16x16xi32>
    %50 = arith.select %48, %5, %49 : vector<16x16xi1>, vector<16x16xi32>
    %cst_18 = arith.constant dense<2147483647> : vector<16xi32>
    %51 = vector.multi_reduction <minsi>, %50, %cst_18 [1] : vector<16x16xi32> to vector<16xi32>
    %52 = vector.shape_cast %51 : vector<16xi32> to vector<1x16xi32>
    %53 = vector.shape_cast %51 : vector<16xi32> to vector<16x1xi32>
    %54 = vector.broadcast %53 : vector<16x1xi32> to vector<16x16xi32>
    %55 = arith.cmpi eq, %5, %54 : vector<16x16xi32>
    %cst_19 = arith.constant 0xFF800000 : f32
    %56 = vector.broadcast %cst_19 : f32 to vector<16x16xf32>
    %57 = arith.select %55, %56, %44 : vector<16x16xi1>, vector<16x16xf32>
    %cst_20 = arith.constant dense<0xFF800000> : vector<16xf32>
    %58 = vector.multi_reduction <maximumf>, %57, %cst_20 [1] : vector<16x16xf32> to vector<16xf32>
    %59 = vector.shape_cast %58 : vector<16xf32> to vector<16x1xf32>
    %60 = vector.broadcast %59 : vector<16x1xf32> to vector<16x16xf32>
    %61 = arith.cmpf oeq, %57, %60 : vector<16x16xf32>
    %c16_i32_21 = arith.constant 16 : i32
    %62 = vector.broadcast %c16_i32_21 : i32 to vector<16x16xi32>
    %63 = arith.select %61, %5, %62 : vector<16x16xi1>, vector<16x16xi32>
    %cst_22 = arith.constant dense<2147483647> : vector<16xi32>
    %64 = vector.multi_reduction <minsi>, %63, %cst_22 [1] : vector<16x16xi32> to vector<16xi32>
    %65 = vector.shape_cast %64 : vector<16xi32> to vector<1x16xi32>
    %66 = vector.shape_cast %64 : vector<16xi32> to vector<16x1xi32>
    %67 = vector.broadcast %66 : vector<16x1xi32> to vector<16x16xi32>
    %68 = arith.cmpi eq, %5, %67 : vector<16x16xi32>
    %cst_23 = arith.constant 0xFF800000 : f32
    %69 = vector.broadcast %cst_23 : f32 to vector<16x16xf32>
    %70 = arith.select %68, %69, %57 : vector<16x16xi1>, vector<16x16xf32>
    %cst_24 = arith.constant dense<0xFF800000> : vector<16xf32>
    %71 = vector.multi_reduction <maximumf>, %70, %cst_24 [1] : vector<16x16xf32> to vector<16xf32>
    %72 = vector.shape_cast %71 : vector<16xf32> to vector<16x1xf32>
    %73 = vector.broadcast %72 : vector<16x1xf32> to vector<16x16xf32>
    %74 = arith.cmpf oeq, %70, %73 : vector<16x16xf32>
    %c16_i32_25 = arith.constant 16 : i32
    %75 = vector.broadcast %c16_i32_25 : i32 to vector<16x16xi32>
    %76 = arith.select %74, %5, %75 : vector<16x16xi1>, vector<16x16xi32>
    %cst_26 = arith.constant dense<2147483647> : vector<16xi32>
    %77 = vector.multi_reduction <minsi>, %76, %cst_26 [1] : vector<16x16xi32> to vector<16xi32>
    %78 = vector.shape_cast %77 : vector<16xi32> to vector<1x16xi32>
    %79 = vector.shape_cast %77 : vector<16xi32> to vector<16x1xi32>
    %80 = vector.broadcast %79 : vector<16x1xi32> to vector<16x16xi32>
    %81 = arith.cmpi eq, %5, %80 : vector<16x16xi32>
    %cst_27 = arith.constant 0xFF800000 : f32
    %82 = vector.broadcast %cst_27 : f32 to vector<16x16xf32>
    %83 = arith.select %81, %82, %70 : vector<16x16xi1>, vector<16x16xf32>
    %cst_28 = arith.constant dense<0xFF800000> : vector<16xf32>
    %84 = vector.multi_reduction <maximumf>, %83, %cst_28 [1] : vector<16x16xf32> to vector<16xf32>
    %85 = vector.shape_cast %84 : vector<16xf32> to vector<16x1xf32>
    %86 = vector.broadcast %85 : vector<16x1xf32> to vector<16x16xf32>
    %87 = arith.cmpf oeq, %83, %86 : vector<16x16xf32>
    %c16_i32_29 = arith.constant 16 : i32
    %88 = vector.broadcast %c16_i32_29 : i32 to vector<16x16xi32>
    %89 = arith.select %87, %5, %88 : vector<16x16xi1>, vector<16x16xi32>
    %cst_30 = arith.constant dense<2147483647> : vector<16xi32>
    %90 = vector.multi_reduction <minsi>, %89, %cst_30 [1] : vector<16x16xi32> to vector<16xi32>
    %91 = vector.shape_cast %90 : vector<16xi32> to vector<1x16xi32>
    %92 = vector.shape_cast %90 : vector<16xi32> to vector<16x1xi32>
    %93 = vector.broadcast %92 : vector<16x1xi32> to vector<16x16xi32>
    %94 = arith.cmpi eq, %5, %93 : vector<16x16xi32>
    %cst_31 = arith.constant 0xFF800000 : f32
    %95 = vector.broadcast %cst_31 : f32 to vector<16x16xf32>
    %96 = arith.select %94, %95, %83 : vector<16x16xi1>, vector<16x16xf32>
    %cst_32 = arith.constant dense<0xFF800000> : vector<16xf32>
    %97 = vector.multi_reduction <maximumf>, %96, %cst_32 [1] : vector<16x16xf32> to vector<16xf32>
    %98 = vector.shape_cast %97 : vector<16xf32> to vector<16x1xf32>
    %99 = vector.broadcast %98 : vector<16x1xf32> to vector<16x16xf32>
    %100 = arith.cmpf oeq, %96, %99 : vector<16x16xf32>
    %c16_i32_33 = arith.constant 16 : i32
    %101 = vector.broadcast %c16_i32_33 : i32 to vector<16x16xi32>
    %102 = arith.select %100, %5, %101 : vector<16x16xi1>, vector<16x16xi32>
    %cst_34 = arith.constant dense<2147483647> : vector<16xi32>
    %103 = vector.multi_reduction <minsi>, %102, %cst_34 [1] : vector<16x16xi32> to vector<16xi32>
    %104 = vector.shape_cast %103 : vector<16xi32> to vector<1x16xi32>
    %105 = tpu.concatenate %13, %26, %39, %52, %65, %78, %91, %104 in 0 : vector<1x16xi32>, vector<1x16xi32>, vector<1x16xi32>, vector<1x16xi32>, vector<1x16xi32>, vector<1x16xi32>, vector<1x16xi32>, vector<1x16xi32> -> vector<8x16xi32>
    %c0_35 = arith.constant 0 : index
    %c0_36 = arith.constant 0 : index
    %c0_37 = arith.constant 0 : index
    %106 = vector.load %arg4[%c0_35, %c0_36, %c0_37] : memref<1x8x16xi32, #tpu.memory_space<vmem>>, vector<1x8x16xi32>
    %107 = vector.shape_cast %106 : vector<1x8x16xi32> to vector<8x16xi32>
    %108 = vector.shape_cast %105 : vector<8x16xi32> to vector<1x8x16xi32>
    tpu.vector_store %arg4[%c0_35, %c0_36, %c0_37], %108 {strides = array<i32>} : memref<1x8x16xi32, #tpu.memory_space<vmem>>, vector<1x8x16xi32>,
    return
  }
  func.func @transform_0(%arg0: i32, %arg1: i32) -> (i32, i32, i32) {
    %c0_i32 = arith.constant 0 : i32
    %c0_i32_0 = arith.constant 0 : i32
    return %arg0, %c0_i32, %arg1 : i32, i32, i32
  }
  func.func @transform_1(%arg0: i32, %arg1: i32) -> (i32, i32, i32) {
    %c0_i32 = arith.constant 0 : i32
    %c0_i32_0 = arith.constant 0 : i32
    %c0_i32_1 = arith.constant 0 : i32
    return %arg0, %c0_i32, %c0_i32_0 : i32, i32, i32
  }
  func.func @transform_2(%arg0: i32, %arg1: i32) -> (i32, i32, i32) {
    %c0_i32 = arith.constant 0 : i32
    %c0_i32_0 = arith.constant 0 : i32
    return %arg0, %c0_i32, %arg1 : i32, i32, i32
  }
}

</mosaic_0001>

<bundles_post_ra>
// kernel: tpu_custom_call.1
= control target key start
LH: loop header
LB: loop body
LE: loop exit
PB: predicated region body
PF: predicated region fallthrough
CT: control target
= control target key end

     0   :  { %7 = vsyncpa [#allocation3], 0  ;;  %s1411_s0 = inlined_call_operand.hbm [shape: f32[2,4,16], index: 0, kind: input, shape index: {}]   ;;  %s1412_s1 = inlined_call_operand.hbm [shape: f32[2,4,16], index: 1, kind: input, shape index: {}]   ;;  %s1413_s2 = inlined_call_operand.hbm [shape: s32[2,8,16], index: 2, kind: output, shape index: {}]  }
   0x1   :  { %9 = vsyncpa [#allocation3 + $0x1], 0 }
   0x2   :  { %10 = vsyncpa [#allocation6], 0 }
   0x3   :  { %12 = vsyncpa [#allocation6 + $0x1], 0 }
   0x4   :  { %13 = vsyncpa [#allocation4], 0 }
   0x5   :  { %15 = vsyncpa [#allocation4 + $0x1], 0  ;;  %s1145_s9 = smov 0   ;;  %s1147_s10 = smov 0  }
   0x6   :  { %s1149_s11 = smov 0   ;;  %s1151_s12 = smov 0  }
   0x7   :  { %s1153_s13 = smov 0   ;;  %s1155_s14 = smov 0  }
   0x8 LB: > { %s890_s15 = sadd.s32 4294967295, %s1125_s14   ;;  %s891_s16 = sadd.s32 4294967294, %s1125_s14   ;;  %s1125_s14 = sphi %s1155_s14, %s21_s14   ;;  %s1121_s13 = sphi %s1153_s13, %s1425_s13   ;;  %s1117_s12 = sphi %s1151_s12, %s1424_s12   ;;  %s1113_s11 = sphi %s1149_s11, %s1423_s11   ;;  %s1109_s10 = sphi %s1147_s10, %s1422_s10   ;;  %s1105_s9 = sphi %s1145_s9, %s1421_s9  }
   0x9   : > { %s33_s17 = sadd.s32 1, %s1121_s13  ;;  %s42_s18 = sadd.s32 1, %s1113_s11 }
   0xa   : > { %p35_p0 = scmp.ge.s32.totalorder %s33_s17, 2  ;;  %p49_p1 = scmp.ne.s32.totalorder %s1113_s11, %s1109_s10 }
   0xb   : > { %p50_p2 = scmp.eq.s32.totalorder %s1125_s14, 0  ;;  %p55_p3 = scmp.ne.s32.totalorder %s1109_s10, %s1105_s9 }
   0xc   : > { %s1427_s17 = smov (%p35_p0, %s33_s17), 0  ;;  %p56_p5 = scmp.eq.s32.totalorder %s890_s15, 0 }
   0xd   : > { %p1186_p4 = por %p50_p2, %p49_p1  ;;  %s37_s20 = ssub.s32 %s1121_s13, %s1427_s17 }
   0xe   : > { %p107_p6 = scmp.eq.s32.totalorder %s890_s15, 1  ;;  %p40_p7 = scmp.eq.s32.totalorder %s37_s20, 0 }
   0xf   : > { %p1192_p8 = por %p56_p5, %p55_p3  ;;  %p113_p10 = scmp.eq.s32.totalorder %s891_s16, 1 }
  0x10   : > { %p1196_p9 = por %p107_p6, %p49_p1  ;;  %p934_p13 = scmp.lt.s32.totalorder %s1125_s14, 2 }
  0x11   : > { %s1201_s23 = scalar_select %p40_p7, %s1113_s11, %s42_s18  }
  0x12   : > { %p1203_p11 = por %p113_p10, %p55_p3  ;;  %s1210_s25 = sand.u32 1, %s1113_s11  }
  0x13   : > { %s894_s26 = sshll.u32 %s1210_s25, 2  ;;  %s895_s27 = sshll.u32 %s1121_s13, 6 }
  0x14   : > { %s143_s30 = scalar_lea.hbm %s1411_s0, %s895_s27  ;;  %s137_s3 = scalar_lea.vmem [#allocation2], %s894_s26 }
  0x15   : > { %s145_s4 = sshll.u32 %s137_s3, 4  ;;  %p1219_p0 = pnand %p934_p13, %p1186_p4  ;;  %s146_s4 = int_to_ptr.vmem [resolvable:$true] %s145_s4 }
  0x16   : > { %p898_p1 = scmp.ge.s32.totalorder %s1125_s14, 1  ;;  %p168_p2 = scmp.lt.s32.totalorder %s1125_s14, 3 }
  0x17   : > { %s134_s6 = scalar_lea.sflag [#allocation3], %s1210_s25  ;;  %p987_p3 = pneg %p1219_p0 }
  0x18   : > { %s998_s7 = scalar_lea.vmem %s146_s4, 64  ;;  %s1127_s8 = smov [#allocation2]  }
  0x19   : > { %p999_p5 = scmp.ne.s32.totalorder %s146_s4, %s998_s7  ;;  %s1003_s15 = sshll.u32 %s1127_s8, 4  ;;  %s1004_s15 = int_to_ptr.vmem [resolvable:$false] %s1003_s15 }
  0x1a   : > { %s1005_s16 = scalar_lea.vmem %s1004_s15, 128  ;;  %p1006_p4 = scmp.lt.s32.totalorder %s146_s4, %s1004_s15 }
  0x1b   : > { %p1001_p6 = pnand %p999_p5, %p987_p3  ;;  %p1007_p10 = scmp.lt.s32.totalorder %s1005_s16, %s998_s7 }
  0x1d   : > { %p1002_p7 = pneg %p1001_p6  ;;  %p1008_p13 = por %p1007_p10, %p1006_p4 }
  0x1f   : > { %p1009_p12 = pnand %p1008_p13, %p1002_p7 }
  0x21   : > { %1012 = shalt.err (!%p1009_p12)
}
  0x22   : > { %926 = dma.hbm_to_vmem [thread:$0]  (!%p1219_p0), %s143_s30, 64, %s146_s4, %s134_s6  }
  0x23   : > { %p1237_p5 = pnand %p898_p1, %p168_p2  ;;  %s161_s28 = scalar_lea.hbm %s1412_s1, %s895_s27 }
  0x24   : > { %s156_s29 = scalar_lea.vmem [#allocation5], %s894_s26  ;;  %s153_s7 = scalar_lea.sflag [#allocation6], %s1210_s25 }
  0x25   : > { %s163_s3 = sshll.u32 %s156_s29, 4  ;;  %s1128_s30 = smov [#allocation5]   ;;  %s164_s3 = int_to_ptr.vmem [resolvable:$true] %s163_s3 }
  0x26   : > { %s1026_s8 = scalar_lea.vmem %s164_s3, 64  ;;  %s1031_s4 = sshll.u32 %s1128_s30, 4  ;;  %s1032_s4 = int_to_ptr.vmem [resolvable:$false] %s1031_s4 }
  0x27   : > { %p1027_p12 = scmp.ne.s32.totalorder %s164_s3, %s1026_s8  ;;  %s1033_s6 = scalar_lea.vmem %s1032_s4, 128 }
  0x28   : > { %p1034_p1 = scmp.lt.s32.totalorder %s164_s3, %s1032_s4  ;;  %p1035_p2 = scmp.lt.s32.totalorder %s1033_s6, %s1026_s8 }
  0x29   : > { %p1029_p6 = pnand %p1027_p12, %p987_p3 }
  0x2a   : > { %p1036_p4 = por %p1035_p2, %p1034_p1 }
  0x2b   : > { %p1030_p7 = pneg %p1029_p6 }
  0x2d   : > { %p1037_p10 = pnand %p1036_p4, %p1030_p7 }
  0x2f   : > { %1040 = shalt.err (!%p1037_p10)
}
  0x30   : > { %929 = dma.hbm_to_vmem [thread:$0]  (!%p1219_p0), %s161_s28, 64, %s164_s3, %s153_s7  }
  0x31   : > { %172 = sbr.rel (%p1237_p5) target bundleno = 3841 (0xf01), region = 28  ;;  %s1253_s25 = sand.u32 (!%p1237_p5), 1, %s1109_s10  }
  0x32   : > { %s899_s26 = sshll.u32 (!%p1237_p5), %s1253_s25, 2  ;;  %s175_s27 = scalar_lea.sflag (!%p1237_p5), [#allocation3], %s1253_s25 }
  0x33   : > { %s178_s15 = scalar_lea.vmem (!%p1237_p5), [#allocation2], %s899_s26 }
  0x36   : > { %1092 = dma.done.wait (%p1192_p8), %s175_s27, 64  }
  0x37   : > { %1094 = vsyncadd (%p1192_p8), %s175_s27, 4294967232  ;;  %s184_s5 = scalar_lea.sflag [#allocation6], %s1253_s25  ;;  %s187_s16 = scalar_lea.vmem [#allocation5], %s899_s26 }
  0x38   : > { %1096 = dma.done.wait (%p1192_p8), %s184_s5, 64  }
  0x39   : > { %1098 = vsyncadd (%p1192_p8), %s184_s5, 4294967232  ;;  %vm254_vm0 = vcmask 1043456   ;;  %v213_v0 = vld [vmem:[%s178_s15] sm:$0xf]  ;;  %v214_v1 = vld [vmem:[%s187_s16] sm:$0xf]  ;;  %v333_v8 = vlaneseq }
  0x3a   : > { %215 = vxpose.xlu0.b32.start.end [1/1] (short) (narrow) %v213_v0, 16  ;;  %912 = vmatprep.subr.msk.mxu0 %vm254_vm0, %v214_v1  ;;  %vm247_vm1 = vcmask 31744   ;;  %vm335_vm2 = vcmask 130048   ;;  %vm693_vm8 = vcmask 130112   ;;  %vm758_vm15 = vcmask 1040384   ;;  %s901_s21 = sshll.u32 %s1253_s25, 3 }
  0x3b   : > { %913 = vmatpush3.msk.msra.mxu0 %vm254_vm0, %v214_v1  ;;  %v1270_v9 = vand.u32 127, %v333_v8  ;;  %v685_v29 = vshrl.u32 %v333_v8, 7  ;;  %s906_s18 = sshll.u32 %s1117_s12, 7  ;;  %s212_s19 = scalar_lea.vmem [#allocation7], %s901_s21 }
  0x3c   : > { %s787_s20 = sshll.u32 %s212_s19, 4  ;;  %s1368_s3 = scalar_lea.hbm %s1413_s2, %s906_s18  ;;  %s788_s20 = int_to_ptr.vmem [resolvable:$true] %s787_s20 }
  0x3d   : > { %v688_v34 = vadd.s32 4294967288, %v1270_v9  ;;  %v1278_v36 = vsub.s32 %v1270_v9, %v685_v29  ;;  %s773_s7 = scalar_lea.sflag [#allocation4], %s1253_s25  ;;  %s1041_s12 = scalar_lea.vmem %s788_s20, 128 }
  0x3e   : > { %p1042_p8 = scmp.ne.s32.totalorder %s788_s20, %s1041_s12  ;;  %s1129_s8 = smov [#allocation7]  }
  0x3f   : > { %v1280_v39 = vsub.s32 %v688_v34, %v685_v29  ;;  %s1045_s30 = sshll.u32 %s1129_s8, 4  ;;  %s1046_s30 = int_to_ptr.vmem [resolvable:$false] %s1045_s30 }
  0x40   : > { %p1043_p0 = pnand %p1042_p8, %p1196_p9  ;;  %s1047_s4 = scalar_lea.vmem %s1046_s30, 256 }
  0x41   : > { %p1048_p13 = scmp.lt.s32.totalorder %s788_s20, %s1046_s30  ;;  %p1049_p5 = scmp.lt.s32.totalorder %s1047_s4, %s1041_s12 }
  0x42   : > { %p1044_p3 = pneg %p1043_p0 }
  0x43   : > { %p1050_p12 = por %p1049_p5, %p1048_p13 }
  0x45   : > { %p1051_p6 = pnand %p1050_p12, %p1044_p3 }
  0xb6   : > { %v231_v2 = vpop.trf.xlu0 }
  0xb7   : > { %914 = vmatprep.mubr.msk.f32.mxu0 %vm247_vm1, %v231_v2 }
  0xba   : > { %v232_v3 = vpop.trf.xlu0 }
  0xbb   : > { %915 = vmatmul.mubr.msk.f32.vlgmr.msra.gmra.mxu0 %vm247_vm1, %v232_v3 }
 0x17b   : > { %v916_v4 = vpop.f32.mrf.mxu0 }
 0x17c   : > { %v339_v5 = vsel %vm335_vm2, %v916_v4, -inf }
 0x17d   : > { %340 = vmax.xlane.f32.xlu1 %v339_v5  ;;  %v324_v6 = vpop.f32.mrf.mxu0 }
 0x17e   : > { %v336_v7 = vsel %vm335_vm2, %v324_v6, -inf }
 0x17f   : > { %337 = vmax.xlane.f32.xlu0 %v336_v7 }
 0x206   : > { %v341_v10 = vpop.xlane.xlu1 %340 }
 0x207   : > { %vm343_vm3 = vcmp.eq.f32.partialorder %v916_v4, %v341_v10 }
 0x208   : > { %v345_v11 = vsel %vm343_vm3, %v1270_v9, 16  ;;  %v338_v12 = vpop.xlane.xlu0 %337 }
 0x209   : > { %vm342_vm4 = vcmp.eq.f32.partialorder %v324_v6, %v338_v12  ;;  %v361_v14 = vsel %vm335_vm2, %v345_v11, 2147483647 }
 0x20a   : > { %v344_v13 = vsel %vm342_vm4, %v1270_v9, 16  ;;  %v363_v18 = vshra.s32 %v361_v14, 16  ;;  %v362_v23 = vand.u32 65535, %v361_v14 }
 0x20b   : > { %v346_v15 = vsel %vm335_vm2, %v344_v13, 2147483647 }
 0x20c   : > { %v348_v16 = vshra.s32 %v346_v15, 16  ;;  %v365_v19 = vcvt.s32.f32 %v363_v18  ;;  %v347_v20 = vand.u32 65535, %v346_v15  ;;  %v364_v26 = vcvt.s32.f32 %v362_v23 }
 0x20e   : > { %v350_v17 = vcvt.s32.f32 %v348_v16  ;;  %v349_v22 = vcvt.s32.f32 %v347_v20 }
 0x210   : > { %351 = vmin.xlane.f32.xlu1 %v350_v17 }
 0x214   : > { %366 = vmin.xlane.f32.xlu1 %v365_v19 }
 0x299   : > { %v352_v21 = vpop.xlane.xlu1 %351 }
 0x29a   : > { %vm353_vm5 = vcmp.eq.f32.partialorder %v350_v17, %v352_v21  ;;  %v358_v28 = vcvt.f32.s32 %v352_v21 }
 0x29b   : > { %v354_v24 = vsel %vm353_vm5, %v349_v22, inf }
 0x29c   : > { %355 = vmin.xlane.f32.xlu1 %v354_v24  ;;  %v359_v31 = vshll.u32 %v358_v28, 16 }
 0x29d   : > { %v367_v25 = vpop.xlane.xlu1 %366 }
 0x29e   : > { %vm368_vm6 = vcmp.eq.f32.partialorder %v365_v19, %v367_v25  ;;  %v373_v32 = vcvt.f32.s32 %v367_v25 }
 0x29f   : > { %v369_v27 = vsel %vm368_vm6, %v364_v26, inf }
 0x2a0   : > { %370 = vmin.xlane.f32.xlu1 %v369_v27  ;;  %v374_v38 = vshll.u32 %v373_v32, 16 }
 0x325   : > { %v356_v30 = vpop.xlane.xlu1 %355 }
 0x326   : > { %v357_v33 = vcvt.f32.s32 %v356_v30 }
 0x328   : > { %v360_v35 = vadd.s32 %v359_v31, %v357_v33 }
 0x329   : > { %v371_v37 = vpop.xlane.xlu1 %370 }
 0x32a   : > { %v372_v40 = vcvt.f32.s32 %v371_v37  ;;  %vm376_vm7 = vcmp.eq.s32.totalorder %v1270_v9, %v360_v35  ;;  %v687_v44 = vrot.slane %v360_v35, %v1278_v36 }
 0x32b   : > { %v378_v41 = vsel %vm376_vm7, -inf, %v324_v6 }
 0x32c   : > { %v375_v42 = vadd.s32 %v374_v38, %v372_v40  ;;  %v380_v43 = vsel %vm335_vm2, %v378_v41, -inf }
 0x32d   : > { %381 = vmax.xlane.f32.xlu1 %v380_v43 }
 0x32e   : > { %v692_v45 = vrot.slane %v375_v42, %v1280_v39  ;;  %vm377_vm9 = vcmp.eq.s32.totalorder %v1270_v9, %v375_v42 }
 0x32f   : > { %v379_v46 = vsel %vm377_vm9, -inf, %v916_v4  ;;  %vm760_vm9 = vcmask 1041408  }
 0x330   : > { %v694_v47 = vsel %vm693_vm8, %v692_v45, %v687_v44  ;;  %v383_v48 = vsel %vm335_vm2, %v379_v46, -inf }
 0x331   : > { %384 = vmax.xlane.f32.xlu1 %v383_v48 }
 0x3b6   : > { %v382_v49 = vpop.xlane.xlu1 %381 }
 0x3b7   : > { %vm386_vm10 = vcmp.eq.f32.partialorder %v378_v41, %v382_v49 }
 0x3b8   : > { %v388_v50 = vsel %vm386_vm10, %v1270_v9, 16 }
 0x3b9   : > { %v390_v51 = vsel %vm335_vm2, %v388_v50, 2147483647 }
 0x3ba   : > { %v385_v52 = vpop.xlane.xlu1 %384  ;;  %v392_v53 = vshra.s32 %v390_v51, 16  ;;  %v391_v59 = vand.u32 65535, %v390_v51 }
 0x3bb   : > { %vm387_vm11 = vcmp.eq.f32.partialorder %v379_v46, %v385_v52 }
 0x3bc   : > { %v389_v54 = vsel %vm387_vm11, %v1270_v9, 16  ;;  %v394_v55 = vcvt.s32.f32 %v392_v53  ;;  %v393_v61 = vcvt.s32.f32 %v391_v59 }
 0x3bd   : > { %v405_v56 = vsel %vm335_vm2, %v389_v54, 2147483647 }
 0x3be   : > { %395 = vmin.xlane.f32.xlu1 %v394_v55  ;;  %v407_v57 = vshra.s32 %v405_v56, 16  ;;  %v406_v62 = vand.u32 65535, %v405_v56 }
 0x3c0   : > { %v409_v58 = vcvt.s32.f32 %v407_v57  ;;  %v408_v1 = vcvt.s32.f32 %v406_v62 }
 0x3c2   : > { %410 = vmin.xlane.f32.xlu1 %v409_v58 }
 0x447   : > { %v396_v60 = vpop.xlane.xlu1 %395 }
 0x448   : > { %vm397_vm12 = vcmp.eq.f32.partialorder %v394_v55, %v396_v60  ;;  %v402_v3 = vcvt.f32.s32 %v396_v60 }
 0x449   : > { %v398_v63 = vsel %vm397_vm12, %v393_v61, inf }
 0x44a   : > { %399 = vmin.xlane.f32.xlu1 %v398_v63  ;;  %v403_v5 = vshll.u32 %v402_v3, 16 }
 0x44b   : > { %v411_v0 = vpop.xlane.xlu1 %410 }
 0x44c   : > { %vm412_vm13 = vcmp.eq.f32.partialorder %v409_v58, %v411_v0  ;;  %v417_v6 = vcvt.f32.s32 %v411_v0 }
 0x44d   : > { %v413_v2 = vsel %vm412_vm13, %v408_v1, inf }
 0x44e   : > { %414 = vmin.xlane.f32.xlu1 %v413_v2  ;;  %v418_v11 = vshll.u32 %v417_v6, 16 }
 0x4d3   : > { %v400_v4 = vpop.xlane.xlu1 %399 }
 0x4d4   : > { %v401_v7 = vcvt.f32.s32 %v400_v4 }
 0x4d6   : > { %v404_v8 = vadd.s32 %v403_v5, %v401_v7 }
 0x4d7   : > { %v415_v10 = vpop.xlane.xlu1 %414 }
 0x4d8   : > { %v416_v12 = vcvt.f32.s32 %v415_v10  ;;  %vm420_vm14 = vcmp.eq.s32.totalorder %v1270_v9, %v404_v8  ;;  %v698_v16 = vrot.slane %v404_v8, %v1278_v36 }
 0x4d9   : > { %v422_v13 = vsel %vm420_vm14, -inf, %v378_v41 }
 0x4da   : > { %v419_v14 = vadd.s32 %v418_v11, %v416_v12  ;;  %v424_v15 = vsel %vm335_vm2, %v422_v13, -inf }
 0x4db   : > { %425 = vmax.xlane.f32.xlu1 %v424_v15 }
 0x4dc   : > { %v702_v17 = vrot.slane %v419_v14, %v1280_v39  ;;  %vm421_vm1 = vcmp.eq.s32.totalorder %v1270_v9, %v419_v14 }
 0x4dd   : > { %v423_v18 = vsel %vm421_vm1, -inf, %v379_v46  ;;  %vm762_vm1 = vcmask 1042432  }
 0x4de   : > { %v703_v19 = vsel %vm693_vm8, %v702_v17, %v698_v16  ;;  %v427_v20 = vsel %vm335_vm2, %v423_v18, -inf }
 0x4df   : > { %v759_v21 = vsel %vm758_vm15, %v694_v47, %v703_v19  ;;  %428 = vmax.xlane.f32.xlu1 %v427_v20 }
 0x564   : > { %v426_v22 = vpop.xlane.xlu1 %425 }
 0x565   : > { %vm430_vm3 = vcmp.eq.f32.partialorder %v422_v13, %v426_v22 }
 0x566   : > { %v432_v23 = vsel %vm430_vm3, %v1270_v9, 16 }
 0x567   : > { %v434_v24 = vsel %vm335_vm2, %v432_v23, 2147483647 }
 0x568   : > { %v429_v25 = vpop.xlane.xlu1 %428  ;;  %v436_v26 = vshra.s32 %v434_v24, 16  ;;  %v435_v32 = vand.u32 65535, %v434_v24 }
 0x569   : > { %vm431_vm4 = vcmp.eq.f32.partialorder %v423_v18, %v429_v25 }
 0x56a   : > { %v433_v27 = vsel %vm431_vm4, %v1270_v9, 16  ;;  %v438_v28 = vcvt.s32.f32 %v436_v26  ;;  %v437_v34 = vcvt.s32.f32 %v435_v32 }
 0x56b   : > { %v449_v29 = vsel %vm335_vm2, %v433_v27, 2147483647 }
 0x56c   : > { %439 = vmin.xlane.f32.xlu1 %v438_v28  ;;  %v451_v30 = vshra.s32 %v449_v29, 16  ;;  %v450_v35 = vand.u32 65535, %v449_v29 }
 0x56e   : > { %v453_v31 = vcvt.s32.f32 %v451_v30  ;;  %v452_v40 = vcvt.s32.f32 %v450_v35 }
 0x570   : > { %454 = vmin.xlane.f32.xlu0 %v453_v31 }
 0x5f5   : > { %v440_v33 = vpop.xlane.xlu1 %439 }
 0x5f6   : > { %vm441_vm5 = vcmp.eq.f32.partialorder %v438_v28, %v440_v33  ;;  %v446_v42 = vcvt.f32.s32 %v440_v33 }
 0x5f7   : > { %v442_v37 = vsel %vm441_vm5, %v437_v34, inf }
 0x5f8   : > { %443 = vmin.xlane.f32.xlu1 %v442_v37  ;;  %v447_v44 = vshll.u32 %v446_v42, 16 }
 0x5f9   : > { %v455_v38 = vpop.xlane.xlu0 %454 }
 0x5fa   : > { %vm456_vm6 = vcmp.eq.f32.partialorder %v453_v31, %v455_v38  ;;  %v461_v45 = vcvt.f32.s32 %v455_v38 }
 0x5fb   : > { %v457_v41 = vsel %vm456_vm6, %v452_v40, inf }
 0x5fc   : > { %458 = vmin.xlane.f32.xlu0 %v457_v41  ;;  %v462_v49 = vshll.u32 %v461_v45, 16 }
 0x681   : > { %v444_v43 = vpop.xlane.xlu1 %443 }
 0x682   : > { %v445_v46 = vcvt.f32.s32 %v444_v43 }
 0x684   : > { %v448_v47 = vadd.s32 %v447_v44, %v445_v46 }
 0x685   : > { %v459_v48 = vpop.xlane.xlu0 %458 }
 0x686   : > { %v460_v50 = vcvt.f32.s32 %v459_v48  ;;  %vm464_vm7 = vcmp.eq.s32.totalorder %v1270_v9, %v448_v47  ;;  %v707_v54 = vrot.slane %v448_v47, %v1278_v36 }
 0x687   : > { %v466_v51 = vsel %vm464_vm7, -inf, %v422_v13 }
 0x688   : > { %v463_v52 = vadd.s32 %v462_v49, %v460_v50  ;;  %v468_v53 = vsel %vm335_vm2, %v466_v51, -inf }
 0x689   : > { %469 = vmax.xlane.f32.xlu1 %v468_v53 }
 0x68a   : > { %v711_v55 = vrot.slane %v463_v52, %v1280_v39  ;;  %vm465_vm10 = vcmp.eq.s32.totalorder %v1270_v9, %v463_v52 }
 0x68b   : > { %v467_v56 = vsel %vm465_vm10, -inf, %v423_v18 }
 0x68c   : > { %v712_v57 = vsel %vm693_vm8, %v711_v55, %v707_v54  ;;  %v471_v58 = vsel %vm335_vm2, %v467_v56, -inf }
 0x68d   : > { %v761_v59 = vsel %vm760_vm9, %v759_v21, %v712_v57  ;;  %472 = vmax.xlane.f32.xlu0 %v471_v58 }
 0x712   : > { %v470_v60 = vpop.xlane.xlu1 %469 }
 0x713   : > { %vm474_vm11 = vcmp.eq.f32.partialorder %v466_v51, %v470_v60 }
 0x714   : > { %v476_v61 = vsel %vm474_vm11, %v1270_v9, 16 }
 0x715   : > { %v478_v62 = vsel %vm335_vm2, %v476_v61, 2147483647 }
 0x716   : > { %v473_v63 = vpop.xlane.xlu0 %472  ;;  %v480_v0 = vshra.s32 %v478_v62, 16  ;;  %v479_v6 = vand.u32 65535, %v478_v62 }
 0x717   : > { %vm475_vm12 = vcmp.eq.f32.partialorder %v467_v56, %v473_v63 }
 0x718   : > { %v477_v1 = vsel %vm475_vm12, %v1270_v9, 16  ;;  %v482_v2 = vcvt.s32.f32 %v480_v0  ;;  %v481_v8 = vcvt.s32.f32 %v479_v6 }
 0x719   : > { %v493_v3 = vsel %vm335_vm2, %v477_v1, 2147483647 }
 0x71a   : > { %483 = vmin.xlane.f32.xlu1 %v482_v2  ;;  %v495_v4 = vshra.s32 %v493_v3, 16  ;;  %v494_v10 = vand.u32 65535, %v493_v3 }
 0x71c   : > { %v497_v5 = vcvt.s32.f32 %v495_v4  ;;  %v496_v13 = vcvt.s32.f32 %v494_v10 }
 0x71e   : > { %498 = vmin.xlane.f32.xlu0 %v497_v5 }
 0x7a3   : > { %v484_v7 = vpop.xlane.xlu1 %483 }
 0x7a4   : > { %vm485_vm13 = vcmp.eq.f32.partialorder %v482_v2, %v484_v7  ;;  %v490_v15 = vcvt.f32.s32 %v484_v7 }
 0x7a5   : > { %v486_v11 = vsel %vm485_vm13, %v481_v8, inf }
 0x7a6   : > { %487 = vmin.xlane.f32.xlu1 %v486_v11  ;;  %v491_v17 = vshll.u32 %v490_v15, 16 }
 0x7a7   : > { %v499_v12 = vpop.xlane.xlu0 %498 }
 0x7a8   : > { %vm500_vm14 = vcmp.eq.f32.partialorder %v497_v5, %v499_v12  ;;  %v505_v18 = vcvt.f32.s32 %v499_v12 }
 0x7a9   : > { %v501_v14 = vsel %vm500_vm14, %v496_v13, inf }
 0x7aa   : > { %502 = vmin.xlane.f32.xlu0 %v501_v14  ;;  %v506_v22 = vshll.u32 %v505_v18, 16 }
 0x82f   : > { %v488_v16 = vpop.xlane.xlu1 %487 }
 0x830   : > { %v489_v19 = vcvt.f32.s32 %v488_v16 }
 0x832   : > { %v492_v20 = vadd.s32 %v491_v17, %v489_v19 }
 0x833   : > { %v503_v21 = vpop.xlane.xlu0 %502 }
 0x834   : > { %v504_v23 = vcvt.f32.s32 %v503_v21  ;;  %vm508_vm15 = vcmp.eq.s32.totalorder %v1270_v9, %v492_v20  ;;  %v716_v27 = vrot.slane %v492_v20, %v1278_v36 }
 0x835   : > { %v510_v24 = vsel %vm508_vm15, -inf, %v466_v51  ;;  %vm765_vm15 = vcmask 1044480  }
 0x836   : > { %v507_v25 = vadd.s32 %v506_v22, %v504_v23  ;;  %v512_v26 = vsel %vm335_vm2, %v510_v24, -inf }
 0x837   : > { %513 = vmax.xlane.f32.xlu1 %v512_v26 }
 0x838   : > { %v720_v28 = vrot.slane %v507_v25, %v1280_v39  ;;  %vm509_vm3 = vcmp.eq.s32.totalorder %v1270_v9, %v507_v25 }
 0x839   : > { %v511_v29 = vsel %vm509_vm3, -inf, %v467_v56 }
 0x83a   : > { %v721_v30 = vsel %vm693_vm8, %v720_v28, %v716_v27  ;;  %v515_v31 = vsel %vm335_vm2, %v511_v29, -inf }
 0x83b   : > { %v763_v32 = vsel %vm762_vm1, %v761_v59, %v721_v30  ;;  %516 = vmax.xlane.f32.xlu0 %v515_v31 }
 0x8c0   : > { %v514_v33 = vpop.xlane.xlu1 %513 }
 0x8c1   : > { %vm518_vm4 = vcmp.eq.f32.partialorder %v510_v24, %v514_v33 }
 0x8c2   : > { %v520_v34 = vsel %vm518_vm4, %v1270_v9, 16 }
 0x8c3   : > { %v522_v35 = vsel %vm335_vm2, %v520_v34, 2147483647 }
 0x8c4   : > { %v517_v37 = vpop.xlane.xlu0 %516  ;;  %v524_v38 = vshra.s32 %v522_v35, 16  ;;  %v523_v45 = vand.u32 65535, %v522_v35 }
 0x8c5   : > { %vm519_vm5 = vcmp.eq.f32.partialorder %v511_v29, %v517_v37 }
 0x8c6   : > { %v521_v40 = vsel %vm519_vm5, %v1270_v9, 16  ;;  %v526_v41 = vcvt.s32.f32 %v524_v38  ;;  %v525_v47 = vcvt.s32.f32 %v523_v45 }
 0x8c7   : > { %v537_v42 = vsel %vm335_vm2, %v521_v40, 2147483647 }
 0x8c8   : > { %527 = vmin.xlane.f32.xlu1 %v526_v41  ;;  %v539_v43 = vshra.s32 %v537_v42, 16  ;;  %v538_v48 = vand.u32 65535, %v537_v42 }
 0x8ca   : > { %v541_v44 = vcvt.s32.f32 %v539_v43  ;;  %v540_v51 = vcvt.s32.f32 %v538_v48 }
 0x8cc   : > { %542 = vmin.xlane.f32.xlu0 %v541_v44 }
 0x951   : > { %v528_v46 = vpop.xlane.xlu1 %527 }
 0x952   : > { %vm529_vm6 = vcmp.eq.f32.partialorder %v526_v41, %v528_v46  ;;  %v534_v53 = vcvt.f32.s32 %v528_v46 }
 0x953   : > { %v530_v49 = vsel %vm529_vm6, %v525_v47, inf }
 0x954   : > { %531 = vmin.xlane.f32.xlu1 %v530_v49  ;;  %v535_v55 = vshll.u32 %v534_v53, 16 }
 0x955   : > { %v543_v50 = vpop.xlane.xlu0 %542 }
 0x956   : > { %vm544_vm7 = vcmp.eq.f32.partialorder %v541_v44, %v543_v50  ;;  %v549_v56 = vcvt.f32.s32 %v543_v50 }
 0x957   : > { %v545_v52 = vsel %vm544_vm7, %v540_v51, inf }
 0x958   : > { %546 = vmin.xlane.f32.xlu0 %v545_v52  ;;  %v550_v60 = vshll.u32 %v549_v56, 16 }
 0x9dd   : > { %v532_v54 = vpop.xlane.xlu1 %531 }
 0x9de   : > { %v533_v57 = vcvt.f32.s32 %v532_v54 }
 0x9e0   : > { %v536_v58 = vadd.s32 %v535_v55, %v533_v57 }
 0x9e1   : > { %v547_v59 = vpop.xlane.xlu0 %546 }
 0x9e2   : > { %v548_v61 = vcvt.f32.s32 %v547_v59  ;;  %vm552_vm9 = vcmp.eq.s32.totalorder %v1270_v9, %v536_v58  ;;  %v725_v1 = vrot.slane %v536_v58, %v1278_v36 }
 0x9e3   : > { %v554_v62 = vsel %vm552_vm9, -inf, %v510_v24  ;;  %vm767_vm9 = vcmask 1045504  }
 0x9e4   : > { %v551_v63 = vadd.s32 %v550_v60, %v548_v61  ;;  %v556_v0 = vsel %vm335_vm2, %v554_v62, -inf }
 0x9e5   : > { %557 = vmax.xlane.f32.xlu1 %v556_v0 }
 0x9e6   : > { %v729_v2 = vrot.slane %v551_v63, %v1280_v39  ;;  %vm553_vm10 = vcmp.eq.s32.totalorder %v1270_v9, %v551_v63 }
 0x9e7   : > { %v555_v3 = vsel %vm553_vm10, -inf, %v511_v29 }
 0x9e8   : > { %v730_v4 = vsel %vm693_vm8, %v729_v2, %v725_v1  ;;  %v559_v5 = vsel %vm335_vm2, %v555_v3, -inf }
 0x9e9   : > { %v764_v6 = vsel %vm254_vm0, %v763_v32, %v730_v4  ;;  %560 = vmax.xlane.f32.xlu0 %v559_v5 }
 0xa6e   : > { %v558_v7 = vpop.xlane.xlu1 %557 }
 0xa6f   : > { %vm562_vm11 = vcmp.eq.f32.partialorder %v554_v62, %v558_v7 }
 0xa70   : > { %v564_v8 = vsel %vm562_vm11, %v1270_v9, 16 }
 0xa71   : > { %v566_v10 = vsel %vm335_vm2, %v564_v8, 2147483647 }
 0xa72   : > { %v561_v11 = vpop.xlane.xlu0 %560  ;;  %v568_v12 = vshra.s32 %v566_v10, 16  ;;  %v567_v18 = vand.u32 65535, %v566_v10 }
 0xa73   : > { %vm563_vm12 = vcmp.eq.f32.partialorder %v555_v3, %v561_v11 }
 0xa74   : > { %v565_v13 = vsel %vm563_vm12, %v1270_v9, 16  ;;  %v570_v14 = vcvt.s32.f32 %v568_v12  ;;  %v569_v20 = vcvt.s32.f32 %v567_v18 }
 0xa75   : > { %v581_v15 = vsel %vm335_vm2, %v565_v13, 2147483647 }
 0xa76   : > { %571 = vmin.xlane.f32.xlu1 %v570_v14  ;;  %v583_v16 = vshra.s32 %v581_v15, 16  ;;  %v582_v21 = vand.u32 65535, %v581_v15 }
 0xa78   : > { %v585_v17 = vcvt.s32.f32 %v583_v16  ;;  %v584_v24 = vcvt.s32.f32 %v582_v21 }
 0xa7a   : > { %586 = vmin.xlane.f32.xlu0 %v585_v17 }
 0xaff   : > { %v572_v19 = vpop.xlane.xlu1 %571 }
 0xb00   : > { %vm573_vm0 = vcmp.eq.f32.partialorder %v570_v14, %v572_v19  ;;  %v578_v26 = vcvt.f32.s32 %v572_v19 }
 0xb01   : > { %v574_v22 = vsel %vm573_vm0, %v569_v20, inf }
 0xb02   : > { %575 = vmin.xlane.f32.xlu1 %v574_v22  ;;  %v579_v28 = vshll.u32 %v578_v26, 16 }
 0xb03   : > { %v587_v23 = vpop.xlane.xlu0 %586 }
 0xb04   : > { %vm588_vm13 = vcmp.eq.f32.partialorder %v585_v17, %v587_v23  ;;  %v593_v29 = vcvt.f32.s32 %v587_v23 }
 0xb05   : > { %v589_v25 = vsel %vm588_vm13, %v584_v24, inf }
 0xb06   : > { %590 = vmin.xlane.f32.xlu0 %v589_v25  ;;  %v594_v33 = vshll.u32 %v593_v29, 16 }
 0xb8b   : > { %v576_v27 = vpop.xlane.xlu1 %575 }
 0xb8c   : > { %v577_v30 = vcvt.f32.s32 %v576_v27 }
 0xb8e   : > { %v580_v31 = vadd.s32 %v579_v28, %v577_v30 }
 0xb8f   : > { %v591_v32 = vpop.xlane.xlu0 %590 }
 0xb90   : > { %v592_v34 = vcvt.f32.s32 %v591_v32  ;;  %vm596_vm14 = vcmp.eq.s32.totalorder %v1270_v9, %v580_v31  ;;  %v734_v40 = vrot.slane %v580_v31, %v1278_v36 }
 0xb91   : > { %v598_v35 = vsel %vm596_vm14, -inf, %v554_v62  ;;  %vm769_vm14 = vcmask 1046528  }
 0xb92   : > { %v595_v37 = vadd.s32 %v594_v33, %v592_v34  ;;  %v600_v38 = vsel %vm335_vm2, %v598_v35, -inf }
 0xb93   : > { %601 = vmax.xlane.f32.xlu1 %v600_v38 }
 0xb94   : > { %v738_v41 = vrot.slane %v595_v37, %v1280_v39  ;;  %vm597_vm1 = vcmp.eq.s32.totalorder %v1270_v9, %v595_v37 }
 0xb95   : > { %v599_v42 = vsel %vm597_vm1, -inf, %v555_v3 }
 0xb96   : > { %v739_v43 = vsel %vm693_vm8, %v738_v41, %v734_v40  ;;  %v603_v44 = vsel %vm335_vm2, %v599_v42, -inf }
 0xb97   : > { %v766_v45 = vsel %vm765_vm15, %v764_v6, %v739_v43  ;;  %604 = vmax.xlane.f32.xlu0 %v603_v44 }
 0xc1c   : > { %v602_v46 = vpop.xlane.xlu1 %601 }
 0xc1d   : > { %vm606_vm3 = vcmp.eq.f32.partialorder %v598_v35, %v602_v46 }
 0xc1e   : > { %v608_v47 = vsel %vm606_vm3, %v1270_v9, 16 }
 0xc1f   : > { %v610_v48 = vsel %vm335_vm2, %v608_v47, 2147483647 }
 0xc20   : > { %v605_v49 = vpop.xlane.xlu0 %604  ;;  %v612_v50 = vshra.s32 %v610_v48, 16  ;;  %v611_v56 = vand.u32 65535, %v610_v48 }
 0xc21   : > { %vm607_vm4 = vcmp.eq.f32.partialorder %v599_v42, %v605_v49 }
 0xc22   : > { %v609_v51 = vsel %vm607_vm4, %v1270_v9, 16  ;;  %v614_v52 = vcvt.s32.f32 %v612_v50  ;;  %v613_v58 = vcvt.s32.f32 %v611_v56 }
 0xc23   : > { %v625_v53 = vsel %vm335_vm2, %v609_v51, 2147483647 }
 0xc24   : > { %615 = vmin.xlane.f32.xlu1 %v614_v52  ;;  %v627_v54 = vshra.s32 %v625_v53, 16  ;;  %v626_v59 = vand.u32 65535, %v625_v53 }
 0xc26   : > { %v629_v55 = vcvt.s32.f32 %v627_v54  ;;  %v628_v62 = vcvt.s32.f32 %v626_v59 }
 0xc28   : > { %630 = vmin.xlane.f32.xlu0 %v629_v55 }
 0xcad   : > { %v616_v57 = vpop.xlane.xlu1 %615 }
 0xcae   : > { %vm617_vm5 = vcmp.eq.f32.partialorder %v614_v52, %v616_v57  ;;  %v622_v0 = vcvt.f32.s32 %v616_v57 }
 0xcaf   : > { %v618_v60 = vsel %vm617_vm5, %v613_v58, inf }
 0xcb0   : > { %619 = vmin.xlane.f32.xlu1 %v618_v60  ;;  %v623_v2 = vshll.u32 %v622_v0, 16 }
 0xcb1   : > { %v631_v61 = vpop.xlane.xlu0 %630 }
 0xcb2   : > { %vm632_vm6 = vcmp.eq.f32.partialorder %v629_v55, %v631_v61  ;;  %v637_v3 = vcvt.f32.s32 %v631_v61 }
 0xcb3   : > { %v633_v63 = vsel %vm632_vm6, %v628_v62, inf }
 0xcb4   : > { %634 = vmin.xlane.f32.xlu0 %v633_v63  ;;  %v638_v7 = vshll.u32 %v637_v3, 16 }
 0xd39   : > { %v620_v1 = vpop.xlane.xlu1 %619 }
 0xd3a   : > { %v621_v4 = vcvt.f32.s32 %v620_v1 }
 0xd3c   : > { %v624_v5 = vadd.s32 %v623_v2, %v621_v4 }
 0xd3d   : > { %v635_v6 = vpop.xlane.xlu0 %634 }
 0xd3e   : > { %v636_v8 = vcvt.f32.s32 %v635_v6  ;;  %vm640_vm7 = vcmp.eq.s32.totalorder %v1270_v9, %v624_v5  ;;  %v743_v13 = vrot.slane %v624_v5, %v1278_v36 }
 0xd3f   : > { %v642_v10 = vsel %vm640_vm7, -inf, %v598_v35 }
 0xd40   : > { %v639_v11 = vadd.s32 %v638_v7, %v636_v8  ;;  %v644_v12 = vsel %vm335_vm2, %v642_v10, -inf }
 0xd41   : > { %645 = vmax.xlane.f32.xlu1 %v644_v12 }
 0xd42   : > { %v747_v14 = vrot.slane %v639_v11, %v1280_v39  ;;  %vm641_vm10 = vcmp.eq.s32.totalorder %v1270_v9, %v639_v11 }
 0xd43   : > { %v643_v15 = vsel %vm641_vm10, -inf, %v599_v42 }
 0xd44   : > { %v748_v16 = vsel %vm693_vm8, %v747_v14, %v743_v13  ;;  %v647_v17 = vsel %vm335_vm2, %v643_v15, -inf }
 0xd45   : > { %v768_v18 = vsel %vm767_vm9, %v766_v45, %v748_v16  ;;  %648 = vmax.xlane.f32.xlu0 %v647_v17 }
 0xdca   : > { %v646_v19 = vpop.xlane.xlu1 %645 }
 0xdcb   : > { %vm650_vm11 = vcmp.eq.f32.partialorder %v642_v10, %v646_v19 }
 0xdcc   : > { %v652_v20 = vsel %vm650_vm11, %v1270_v9, 16 }
 0xdcd   : > { %v654_v21 = vsel %vm335_vm2, %v652_v20, 2147483647 }
 0xdce   : > { %v649_v22 = vpop.xlane.xlu0 %648  ;;  %v656_v23 = vshra.s32 %v654_v21, 16  ;;  %v655_v29 = vand.u32 65535, %v654_v21 }
 0xdcf   : > { %vm651_vm12 = vcmp.eq.f32.partialorder %v643_v15, %v649_v22 }
 0xdd0   : > { %v653_v24 = vsel %vm651_vm12, %v1270_v9, 16  ;;  %v658_v25 = vcvt.s32.f32 %v656_v23  ;;  %v657_v31 = vcvt.s32.f32 %v655_v29 }
 0xdd1   : > { %v669_v26 = vsel %vm335_vm2, %v653_v24, 2147483647 }
 0xdd2   : > { %659 = vmin.xlane.f32.xlu1 %v658_v25  ;;  %v671_v27 = vshra.s32 %v669_v26, 16  ;;  %v670_v32 = vand.u32 65535, %v669_v26 }
 0xdd4   : > { %v673_v28 = vcvt.s32.f32 %v671_v27  ;;  %v672_v35 = vcvt.s32.f32 %v670_v32 }
 0xdd6   : > { %674 = vmin.xlane.f32.xlu0 %v673_v28 }
 0xe5b   : > { %v660_v30 = vpop.xlane.xlu1 %659 }
 0xe5c   : > { %vm661_vm0 = vcmp.eq.f32.partialorder %v658_v25, %v660_v30  ;;  %v666_v37 = vcvt.f32.s32 %v660_v30 }
 0xe5d   : > { %v662_v33 = vsel %vm661_vm0, %v657_v31, inf }
 0xe5e   : > { %663 = vmin.xlane.f32.xlu1 %v662_v33  ;;  %v667_v42 = vshll.u32 %v666_v37, 16 }
 0xe5f   : > { %v675_v34 = vpop.xlane.xlu0 %674 }
 0xe60   : > { %vm676_vm13 = vcmp.eq.f32.partialorder %v673_v28, %v675_v34  ;;  %v681_v40 = vcvt.f32.s32 %v675_v34 }
 0xe61   : > { %v677_v9 = vsel %vm676_vm13, %v672_v35, inf }
 0xe62   : > { %678 = vmin.xlane.f32.xlu0 %v677_v9  ;;  %v682_v44 = vshll.u32 %v681_v40, 16 }
 0xee7   : > { %v664_v38 = vpop.xlane.xlu1 %663 }
 0xee8   : > { %v665_v41 = vcvt.f32.s32 %v664_v38 }
 0xeea   : > { %v668_v45 = vadd.s32 %v667_v42, %v665_v41 }
 0xeeb   : > { %v679_v43 = vpop.xlane.xlu0 %678 }
 0xeec   : > { %v680_v46 = vcvt.f32.s32 %v679_v43  ;;  %v752_v48 = vrot.slane %v668_v45, %v1278_v36 }
 0xeee   : > { %v683_v47 = vadd.s32 %v682_v44, %v680_v46 }
 0xef0   : > { %v756_v49 = vrot.slane %v683_v47, %v1280_v39 }
 0xef2   : > { %v757_v50 = vsel %vm693_vm8, %v756_v49, %v752_v48 }
 0xef3   : > { %v770_v51 = vsel %vm769_vm14, %v768_v18, %v757_v50 }
 0xef4   : > { %771 = vst.msk [vmem:[%s212_s19] sm:$0xff] %vm335_vm2, %v770_v51 }
 0xef5   : > { %1054 = shalt.err (!%p1051_p6)
}
 0xef6   : > { %s1055_s6 = scalar_lea.hbm %s1368_s3, 128  ;;  %s1059_s27 = scalar_lea.hbm %s1413_s2, 256 }
 0xef7   : > { %p1056_p7 = scmp.ne.s32.totalorder %s1368_s3, %s1055_s6  ;;  %p1060_p4 = scmp.lt.s32.totalorder %s1368_s3, %s1413_s2 }
 0xef8   : > { %p1061_p10 = scmp.lt.s32.totalorder %s1059_s27, %s1055_s6 }
 0xef9   : > { %p1057_p1 = pnand %p1056_p7, %p1196_p9 }
 0xefa   : > { %p1062_p8 = por %p1061_p10, %p1060_p4 }
 0xefb   : > { %p1058_p2 = pneg %p1057_p1 }
 0xefd   : > { %p1063_p0 = pnand %p1062_p8, %p1058_p2 }
 0xeff   : > { %1066 = shalt.err (!%p1063_p0)
}
 0xf00   : > { %921 = dma.vmem_to_hbm [thread:$0]  (%p1196_p9), %s788_s20, 128, %s1368_s3, %s773_s7  }
 0xf01 PF: > { %s799_s16 = sand.u32 1, %s1105_s9   ;;  %p1420_p3 = scmp.ge.s32.totalorder %s1125_s14, 2 }
 0xf02   : > { %s800_s21 = scalar_lea.sflag [#allocation4], %s799_s16 }
 0xf03   : > { %p931_p13 = pnand %p1420_p3, %p1203_p11 }
 0xf05   : > { %p932_p5 = pneg %p931_p13 }
 0xf07   : > { %1100 = dma.done.wait (%p932_p5), %s800_s21, 128  }
 0xf08   : > { %1102 = vsyncadd (%p932_p5), %s800_s21, 4294967168  ;;  %s21_s14 = sadd.s32 1, %s1125_s14   ;;  %s1421_s9 = smov %s1109_s10 }
 0xf09   : > { %p18_p12 = scmp.ge.s32.totalorder %s21_s14, 4   ;;  %s1422_s10 = smov %s1113_s11 }
 0xf0a   : > { %s1423_s11 = smov %s1201_s23  ;;  %s1424_s12 = smov %s1121_s13 }
 0xf0b   : > { %s1425_s13 = smov %s1427_s17  ;;  %20 = sbr.rel (!%p18_p12) target bundleno = 8 (0x8), region = 86 }
 0xf10   :  { %805 = vsyncpa [#allocation3], 1 }
 0xf11   :  { %807 = vsyncpa [#allocation3 + $0x1], 1 }
 0xf12   :  { %808 = vsyncpa [#allocation6], 1 }
 0xf13   :  { %810 = vsyncpa [#allocation6 + $0x1], 1 }
 0xf14   :  { %811 = vsyncpa [#allocation4], 1 }
 0xf15   :  { %813 = vsyncpa [#allocation4 + $0x1], 1 }

</bundles_post_ra>
